<compile_context>
chip_gen: v6e
topology: v6e:2x2x1
jax: 0.10.0
libtpu: 0.0.40
codegen_flags: <defaults>
</compile_context>

<pallas_src>
import math

import jax
import jax.numpy as jnp
from jax.experimental import pallas as pl
from jax.experimental.pallas import tpu as pltpu


def _policy_kernel(x_ref, w1_ref, b1_ref, w2_ref, b2_ref, wh_ref, bh_ref, out_ref):
    x = x_ref[...]                         # (TB, 3)  f32
    w1 = w1_ref[...]                       # (3, 64)  f32

    # linear1 (3 -> 64) + relu as 3 VPU broadcast FMAs (MXU pass with K=3 would be
    # mostly zero padding; keep the MXU free for the matmuls that matter).
    h1 = (x[:, 0:1] * w1[0:1, :]
          + x[:, 1:2] * w1[1:2, :]
          + x[:, 2:3] * w1[2:3, :]
          + b1_ref[...])
    h1 = jnp.maximum(h1, 0.0)

    # linear2 (64 -> 256) + relu, f32 MXU matmul with f32 accumulation.
    h2 = jnp.dot(h1, w2_ref[...], preferred_element_type=jnp.float32) + b2_ref[...]
    h2 = jnp.maximum(h2, 0.0)

    # fused heads (256 -> 2): column 0 = mu pre-activation, column 1 = stdev pre-activation.
    y = jnp.dot(h2, wh_ref[...], preferred_element_type=jnp.float32) + bh_ref[...]

    # Apply both head activations on the full (TB, 2) tile and select per lane:
    # avoids lane-width-1 slices/concats and emits a single full-tile store.
    lane = jax.lax.broadcasted_iota(jnp.int32, y.shape, 1)
    mu_full = 2.0 * jnp.tanh(y)
    stdev_full = jnp.logaddexp(y, 0.0) + 0.001        # numerically stable softplus + 1e-3
    out_ref[...] = jnp.where(lane == 0, mu_full, stdev_full)


def _round_up(n, m):
    return ((n + m - 1) // m) * m


def policy_net_continuous(x, params, *, tile_b=2048):
    """x: (B, 3) float32. params: dict of pre-transposed weights/biases.

    Returns (mu, stdev), each (B, 1) float32.

    tile_b: max batch tile. Large tiles (1-4K) amortize the ~0.35 us per-grid-step
    overhead; the tile is additionally capped at ~half the batch (rounded to 256) so
    the grid keeps >=2 steps for v7x's two TensorCores. Per-tile VMEM at tb=2048 is
    ~8 MiB (f32 h2 dominates), far below the 32 MiB default scoped limit on every
    generation, so no vmem_limit_bytes override is needed.
    """
    B, F = x.shape
    assert F == 3

    if B <= 256:
        # Small batch: one sublane-aligned tile; splitting further is pure overhead.
        tb = max(8, _round_up(B, 8))
    else:
        # Large batch: big tiles, but keep >=2 grid steps so "parallel" batch sharding
        # can feed both TensorCores on v7x.
        half = _round_up(_round_up(B, 256) // 2, 256)
        tb = max(256, min(_round_up(tile_b, 256), half))
    Bp = pl.cdiv(B, tb) * tb
    xp = jnp.pad(x, ((0, Bp - B), (0, 0))) if Bp != B else x

    # Everything stays f32: weights are grid-resident so narrower storage saves no
    # steady-state DMA, and the MXU is nowhere near the bottleneck at K=64 / N=2.
    w1 = params["w1"].astype(jnp.float32)
    b1 = params["b1"].astype(jnp.float32)
    w2 = params["w2"].astype(jnp.float32)
    b2 = params["b2"].astype(jnp.float32)
    wh = jnp.concatenate([params["wmu"], params["wsd"]], axis=1).astype(jnp.float32)
    bh = jnp.concatenate([params["bmu"], params["bsd"]], axis=1).astype(jnp.float32)

    batch_map = lambda i: (i, 0)     # pipelined per batch tile
    const_map = lambda i: (0, 0)     # weights/biases: resident in VMEM across the grid

    weight_bytes = 4 * (3 * 64 + 64 + 64 * 256 + 256 + 256 * 2 + 2)
    cost = pl.CostEstimate(
        flops=2 * Bp * (3 * 64 + 64 * 256 + 256 * 2),
        transcendentals=4 * Bp,                      # tanh + exp on the (TB, 2) tile
        bytes_accessed=20 * Bp + weight_bytes,       # x (12B/row) + out (8B/row) + weights
    )

    out = pl.pallas_call(
        _policy_kernel,
        out_shape=jax.ShapeDtypeStruct((Bp, 2), jnp.float32),
        grid=(Bp // tb,),
        in_specs=[
            pl.BlockSpec((tb, 3), batch_map),     # x
            pl.BlockSpec((3, 64), const_map),     # w1
            pl.BlockSpec((1, 64), const_map),     # b1
            pl.BlockSpec((64, 256), const_map),   # w2
            pl.BlockSpec((1, 256), const_map),    # b2
            pl.BlockSpec((256, 2), const_map),    # fused head weights [wmu | wsd]
            pl.BlockSpec((1, 2), const_map),      # fused head biases  [bmu | bsd]
        ],
        out_specs=pl.BlockSpec((tb, 2), batch_map),
        compiler_params=pltpu.CompilerParams(
            dimension_semantics=("parallel",),     # shard batch tiles across TCs on v7x
        ),
        cost_estimate=cost,
    )(xp, w1, b1, w2, b2, wh, bh)

    mu = out[:B, 0:1]
    stdev = out[:B, 1:2]
    return mu, stdev


def init_params(key):
    """Deterministic init mimicking PyTorch nn.Linear defaults:
    U(-1/sqrt(fan_in), 1/sqrt(fan_in)) for both weight and bias.
    Weights are stored (in, out) so the kernel does x @ W."""
    def linear(key, fan_in, fan_out):
        kw, kb = jax.random.split(key)
        bound = 1.0 / math.sqrt(fan_in)
        w = jax.random.uniform(kw, (fan_in, fan_out), jnp.float32, -bound, bound)
        b = jax.random.uniform(kb, (1, fan_out), jnp.float32, -bound, bound)
        return w, b

    k1, k2, k3, k4 = jax.random.split(key, 4)
    w1, b1 = linear(k1, 3, 64)
    w2, b2 = linear(k2, 64, 256)
    wmu, bmu = linear(k3, 256, 1)
    wsd, bsd = linear(k4, 256, 1)
    return dict(w1=w1, b1=b1, w2=w2, b2=b2,
                wmu=wmu, bmu=bmu, wsd=wsd, bsd=bsd)


def reference_forward(x, p):
    """Plain-JAX reference for correctness checking."""
    h1 = jnp.maximum(x @ p["w1"] + p["b1"], 0.0)
    h2 = jnp.maximum(h1 @ p["w2"] + p["b2"], 0.0)
    mu = 2.0 * jnp.tanh(h2 @ p["wmu"] + p["bmu"])
    stdev = jax.nn.softplus(h2 @ p["wsd"] + p["bsd"]) + 0.001
    return mu, stdev


if __name__ == "__main__":
    key = jax.random.PRNGKey(0)
    kp, kx = jax.random.split(key)
    params = init_params(kp)

    # Small batch (Pendulum-v1 observation dim is 3): single small tile, one grid step.
    B = 8
    x = jax.random.normal(kx, (B, 3), jnp.float32)
    mu, stdev = policy_net_continuous(x, params)
    jax.block_until_ready((mu, stdev))
    mu_ref, stdev_ref = reference_forward(x, params)
    assert mu.shape == (B, 1) and stdev.shape == (B, 1)
    assert jnp.allclose(mu, mu_ref, atol=1e-5, rtol=1e-5)
    assert jnp.allclose(stdev, stdev_ref, atol=1e-5, rtol=1e-5)
    assert bool(jnp.all(stdev > 0.0))

    # Mid batch, non-multiple: exercises padding + >=2 grid steps (tb=512, grid=2).
    xb = jax.random.normal(jax.random.PRNGKey(1), (1000, 3), jnp.float32)
    mu_b, stdev_b = policy_net_continuous(xb, params)
    jax.block_until_ready((mu_b, stdev_b))
    mu_br, stdev_br = reference_forward(xb, params)
    assert jnp.allclose(mu_b, mu_br, atol=1e-5, rtol=1e-5)
    assert jnp.allclose(stdev_b, stdev_br, atol=1e-5, rtol=1e-5)

    # Large batch: big tiles amortize per-step overhead (tb=2048, multi-step grid).
    xl = jax.random.normal(jax.random.PRNGKey(2), (9000, 3), jnp.float32)
    mu_l, stdev_l = policy_net_continuous(xl, params)
    jax.block_until_ready((mu_l, stdev_l))
    mu_lr, stdev_lr = reference_forward(xl, params)
    assert jnp.allclose(mu_l, mu_lr, atol=1e-5, rtol=1e-5)
    assert jnp.allclose(stdev_l, stdev_lr, atol=1e-5, rtol=1e-5)

    print("KERNEL_OK")
</pallas_src>

<mosaic_0001>
module attributes {stable_mosaic.version = 11 : i64} {
  func.func @_policy_kernel(%arg0: i32, %arg1: memref<8x3xf32, #tpu.memory_space<vmem>>, %arg2: memref<3x64xf32, #tpu.memory_space<vmem>>, %arg3: memref<1x64xf32, #tpu.memory_space<vmem>>, %arg4: memref<64x256xf32, #tpu.memory_space<vmem>>, %arg5: memref<1x256xf32, #tpu.memory_space<vmem>>, %arg6: memref<256x2xf32, #tpu.memory_space<vmem>>, %arg7: memref<1x2xf32, #tpu.memory_space<vmem>>, %arg8: memref<8x2xf32, #tpu.memory_space<vmem>>) attributes {dimension_semantics = [#tpu.dimension_semantics<parallel>], iteration_bounds = array<i64: 1>, scalar_prefetch = 0 : i64, scratch_operands = 0 : i64, tpu.core_type = #tpu.core_type<tc>, window_params = [{transform_indices = @transform_0, window_bounds = array<i64: 8, 3>}, {pipeline_mode = #tpu.pipeline_mode<synchronous>, transform_indices = @transform_1, window_bounds = array<i64: 3, 64>}, {pipeline_mode = #tpu.pipeline_mode<synchronous>, transform_indices = @transform_2, window_bounds = array<i64: 1, 64>}, {pipeline_mode = #tpu.pipeline_mode<synchronous>, transform_indices = @transform_3, window_bounds = array<i64: 64, 256>}, {pipeline_mode = #tpu.pipeline_mode<synchronous>, transform_indices = @transform_4, window_bounds = array<i64: 1, 256>}, {pipeline_mode = #tpu.pipeline_mode<synchronous>, transform_indices = @transform_5, window_bounds = array<i64: 256, 2>}, {pipeline_mode = #tpu.pipeline_mode<synchronous>, transform_indices = @transform_6, window_bounds = array<i64: 1, 2>}, {transform_indices = @transform_7, window_bounds = array<i64: 8, 2>}]} {
    %c0 = arith.constant 0 : index
    %c0_0 = arith.constant 0 : index
    %0 = vector.load %arg1[%c0, %c0_0] : memref<8x3xf32, #tpu.memory_space<vmem>>, vector<8x3xf32>
    %c0_1 = arith.constant 0 : index
    %c0_2 = arith.constant 0 : index
    %1 = vector.load %arg2[%c0_1, %c0_2] : memref<3x64xf32, #tpu.memory_space<vmem>>, vector<3x64xf32>
    %2 = vector.extract_strided_slice %0 {offsets = [0, 0], sizes = [8, 1], strides = [1, 1]} : vector<8x3xf32> to vector<8x1xf32>
    %3 = vector.extract_strided_slice %1 {offsets = [0, 0], sizes = [1, 64], strides = [1, 1]} : vector<3x64xf32> to vector<1x64xf32>
    %4 = vector.broadcast %2 : vector<8x1xf32> to vector<8x64xf32>
    %5 = vector.broadcast %3 : vector<1x64xf32> to vector<8x64xf32>
    %6 = arith.mulf %4, %5 : vector<8x64xf32>
    %7 = vector.extract_strided_slice %0 {offsets = [0, 1], sizes = [8, 1], strides = [1, 1]} : vector<8x3xf32> to vector<8x1xf32>
    %8 = vector.extract_strided_slice %1 {offsets = [1, 0], sizes = [1, 64], strides = [1, 1]} : vector<3x64xf32> to vector<1x64xf32>
    %9 = vector.broadcast %7 : vector<8x1xf32> to vector<8x64xf32>
    %10 = vector.broadcast %8 : vector<1x64xf32> to vector<8x64xf32>
    %11 = arith.mulf %9, %10 : vector<8x64xf32>
    %12 = arith.addf %6, %11 : vector<8x64xf32>
    %13 = vector.extract_strided_slice %0 {offsets = [0, 2], sizes = [8, 1], strides = [1, 1]} : vector<8x3xf32> to vector<8x1xf32>
    %14 = vector.extract_strided_slice %1 {offsets = [2, 0], sizes = [1, 64], strides = [1, 1]} : vector<3x64xf32> to vector<1x64xf32>
    %15 = vector.broadcast %13 : vector<8x1xf32> to vector<8x64xf32>
    %16 = vector.broadcast %14 : vector<1x64xf32> to vector<8x64xf32>
    %17 = arith.mulf %15, %16 : vector<8x64xf32>
    %18 = arith.addf %12, %17 : vector<8x64xf32>
    %c0_3 = arith.constant 0 : index
    %c0_4 = arith.constant 0 : index
    %19 = vector.load %arg3[%c0_3, %c0_4] : memref<1x64xf32, #tpu.memory_space<vmem>>, vector<1x64xf32>
    %20 = vector.broadcast %19 : vector<1x64xf32> to vector<8x64xf32>
    %21 = arith.addf %18, %20 : vector<8x64xf32>
    %cst = arith.constant 0.000000e+00 : f32
    %22 = vector.broadcast %cst : f32 to vector<8x64xf32>
    %23 = arith.maximumf %21, %22 : vector<8x64xf32>
    %c0_5 = arith.constant 0 : index
    %c0_6 = arith.constant 0 : index
    %24 = vector.load %arg4[%c0_5, %c0_6] : memref<64x256xf32, #tpu.memory_space<vmem>>, vector<64x256xf32>
    %cst_7 = arith.constant dense<0.000000e+00> : vector<8x256xf32>
    %25 = tpu.matmul %23, %24, %cst_7 {dimension_numbers = #tpu.dot_dimension_numbers<[1], [0], [0], [1], [0, 0, 1, 1], [], []>} : vector<8x64xf32>, vector<64x256xf32>, vector<8x256xf32> -> vector<8x256xf32>
    %c0_8 = arith.constant 0 : index
    %c0_9 = arith.constant 0 : index
    %26 = vector.load %arg5[%c0_8, %c0_9] : memref<1x256xf32, #tpu.memory_space<vmem>>, vector<1x256xf32>
    %27 = vector.broadcast %26 : vector<1x256xf32> to vector<8x256xf32>
    %28 = arith.addf %25, %27 : vector<8x256xf32>
    %cst_10 = arith.constant 0.000000e+00 : f32
    %29 = vector.broadcast %cst_10 : f32 to vector<8x256xf32>
    %30 = arith.maximumf %28, %29 : vector<8x256xf32>
    %c0_11 = arith.constant 0 : index
    %c0_12 = arith.constant 0 : index
    %31 = vector.load %arg6[%c0_11, %c0_12] : memref<256x2xf32, #tpu.memory_space<vmem>>, vector<256x2xf32>
    %cst_13 = arith.constant dense<0.000000e+00> : vector<8x2xf32>
    %32 = tpu.matmul %30, %31, %cst_13 {dimension_numbers = #tpu.dot_dimension_numbers<[1], [0], [0], [1], [0, 0, 1, 1], [], []>} : vector<8x256xf32>, vector<256x2xf32>, vector<8x2xf32> -> vector<8x2xf32>
    %c0_14 = arith.constant 0 : index
    %c0_15 = arith.constant 0 : index
    %33 = vector.load %arg7[%c0_14, %c0_15] : memref<1x2xf32, #tpu.memory_space<vmem>>, vector<1x2xf32>
    %34 = vector.broadcast %33 : vector<1x2xf32> to vector<8x2xf32>
    %35 = arith.addf %32, %34 : vector<8x2xf32>
    %36 = tpu.iota {dimensions = array<i32: 1>} : vector<8x2xi32>
    %37 = math.tanh %35 : vector<8x2xf32>
    %cst_16 = arith.constant 2.000000e+00 : f32
    %38 = vector.broadcast %cst_16 : f32 to vector<8x2xf32>
    %39 = arith.mulf %38, %37 : vector<8x2xf32>
    %cst_17 = arith.constant 0.000000e+00 : f32
    %40 = vector.broadcast %cst_17 : f32 to vector<8x2xf32>
    %41 = arith.maximumf %35, %40 : vector<8x2xf32>
    %42 = vector.broadcast %cst_17 : f32 to vector<8x2xf32>
    %43 = arith.subf %35, %42 : vector<8x2xf32>
    %44 = arith.cmpf one, %43, %43 : vector<8x2xf32>
    %45 = vector.broadcast %cst_17 : f32 to vector<8x2xf32>
    %46 = arith.addf %35, %45 : vector<8x2xf32>
    %47 = math.absf %43 : vector<8x2xf32>
    %cst_18 = arith.constant 0.000000e+00 : f32
    %48 = vector.broadcast %cst_18 : f32 to vector<8x2xf32>
    %49 = arith.subf %48, %47 : vector<8x2xf32>
    %50 = math.exp %49 : vector<8x2xf32>
    %51 = math.log1p %50 : vector<8x2xf32>
    %52 = arith.addf %41, %51 : vector<8x2xf32>
    %53 = arith.select %44, %46, %52 : vector<8x2xi1>, vector<8x2xf32>
    %cst_19 = arith.constant 1.000000e-03 : f32
    %54 = vector.broadcast %cst_19 : f32 to vector<8x2xf32>
    %55 = arith.addf %53, %54 : vector<8x2xf32>
    %c0_i32 = arith.constant 0 : i32
    %56 = vector.broadcast %c0_i32 : i32 to vector<8x2xi32>
    %57 = arith.cmpi eq, %36, %56 : vector<8x2xi32>
    %58 = arith.select %57, %39, %55 : vector<8x2xi1>, vector<8x2xf32>
    %c0_20 = arith.constant 0 : index
    %c0_21 = arith.constant 0 : index
    %59 = vector.load %arg8[%c0_20, %c0_21] : memref<8x2xf32, #tpu.memory_space<vmem>>, vector<8x2xf32>
    tpu.vector_store %arg8[%c0_20, %c0_21], %58 {strides = array<i32>} : memref<8x2xf32, #tpu.memory_space<vmem>>, vector<8x2xf32>,
    return
  }
  func.func @transform_0(%arg0: i32) -> (i32, i32) {
    %c0_i32 = arith.constant 0 : i32
    %c0_i32_0 = arith.constant 0 : i32
    return %arg0, %c0_i32 : i32, i32
  }
  func.func @transform_1(%arg0: i32) -> (i32, i32) {
    %c0_i32 = arith.constant 0 : i32
    %c0_i32_0 = arith.constant 0 : i32
    %c0_i32_1 = arith.constant 0 : i32
    return %c0_i32, %c0_i32_0 : i32, i32
  }
  func.func @transform_2(%arg0: i32) -> (i32, i32) {
    %c0_i32 = arith.constant 0 : i32
    %c0_i32_0 = arith.constant 0 : i32
    %c0_i32_1 = arith.constant 0 : i32
    return %c0_i32, %c0_i32_0 : i32, i32
  }
  func.func @transform_3(%arg0: i32) -> (i32, i32) {
    %c0_i32 = arith.constant 0 : i32
    %c0_i32_0 = arith.constant 0 : i32
    %c0_i32_1 = arith.constant 0 : i32
    return %c0_i32, %c0_i32_0 : i32, i32
  }
  func.func @transform_4(%arg0: i32) -> (i32, i32) {
    %c0_i32 = arith.constant 0 : i32
    %c0_i32_0 = arith.constant 0 : i32
    %c0_i32_1 = arith.constant 0 : i32
    return %c0_i32, %c0_i32_0 : i32, i32
  }
  func.func @transform_5(%arg0: i32) -> (i32, i32) {
    %c0_i32 = arith.constant 0 : i32
    %c0_i32_0 = arith.constant 0 : i32
    %c0_i32_1 = arith.constant 0 : i32
    return %c0_i32, %c0_i32_0 : i32, i32
  }
  func.func @transform_6(%arg0: i32) -> (i32, i32) {
    %c0_i32 = arith.constant 0 : i32
    %c0_i32_0 = arith.constant 0 : i32
    %c0_i32_1 = arith.constant 0 : i32
    return %c0_i32, %c0_i32_0 : i32, i32
  }
  func.func @transform_7(%arg0: i32) -> (i32, i32) {
    %c0_i32 = arith.constant 0 : i32
    %c0_i32_0 = arith.constant 0 : i32
    return %arg0, %c0_i32 : i32, i32
  }
}

</mosaic_0001>

<bundles_post_ra>
// kernel: tpu_custom_call.1
= control target key start
LH: loop header
LB: loop body
LE: loop exit
PB: predicated region body
PF: predicated region fallthrough
CT: control target
= control target key end

     0   :  { %v364_v0 = vmov 0   ;;  %v365_v2 = vmov 2   ;;  %v366_v9 = vmov 1   ;;  %v367_v17 = vmov 0.0   ;;  %s572_s0 = inlined_call_operand.vmem [shape: f32[8,3], index: 0, kind: input, shape index: {}]   ;;  %s573_s3 = inlined_call_operand.vmem [shape: f32[64,256], index: 3, kind: input, shape index: {}]   ;;  %s574_s5 = inlined_call_operand.vmem [shape: f32[256,2], index: 5, kind: input, shape index: {}]   ;;  %s575_s1 = inlined_call_operand.vmem [shape: f32[3,64], index: 1, kind: input, shape index: {}]   ;;  %s576_s2 = inlined_call_operand.vmem [shape: f32[1,64], index: 2, kind: input, shape index: {}]   ;;  %s577_s4 = inlined_call_operand.vmem [shape: f32[1,256], index: 4, kind: input, shape index: {}]   ;;  %s578_s6 = inlined_call_operand.vmem [shape: f32[1,2], index: 6, kind: input, shape index: {}]   ;;  %s579_s7 = inlined_call_operand.vmem [shape: f32[8,2], index: 7, kind: output, shape index: {}]  }
   0x1   :  { %354 = vset.pattern.permute.xlu0 %v364_v0  ;;  %v26_v1 = vld [vmem:[%s572_s0] sm:$0xff]  ;;  %356 = vset.pattern.permute.xlu1 %v365_v2  ;;  %v82_v3 = vld [vmem:[%s573_s3 + $0x78] sm:$0xff]  ;;  %v81_v4 = vld [vmem:[%s573_s3 + $0x70] sm:$0xff]  ;;  %v33_v45 = vlaneseq  ;;  %vm95_vm0 = vcmask 523264   ;;  %vm306_vm4 = vcmask 15360  }
   0x2   :  { %30 = vperm.xlu0 %354, %v26_v1   ;;  %49 = vperm.xlu1 %356, %v26_v1   ;;  %v80_v5 = vld [vmem:[%s573_s3 + $0x68] sm:$0xff]  ;;  %v79_v6 = vld [vmem:[%s573_s3 + $0x60] sm:$0xff]  ;;  %v78_v7 = vld [vmem:[%s573_s3 + $0x58] sm:$0xff] }
   0x3   :  { %115 = vmatprep.subr.mxu0 %v82_v3  ;;  %v77_v8 = vld [vmem:[%s573_s3 + $0x50] sm:$0xff]  ;;  %v76_v10 = vld [vmem:[%s573_s3 + $0x48] sm:$0xff]  ;;  %v75_v11 = vld [vmem:[%s573_s3 + $0x40] sm:$0xff]  ;;  %163 = vmatprep.mubr.f32.mxu0 %v367_v17  ;;  %v34_v46 = vshrl.u32 %v33_v45, 7 }
   0x4   :  { %116 = vmatpush1.msra.mxu0 %v81_v4  ;;  %v74_v12 = vld [vmem:[%s573_s3 + $0x38] sm:$0xff]  ;;  %v73_v13 = vld [vmem:[%s573_s3 + $0x30] sm:$0xff]  ;;  %v72_v14 = vld [vmem:[%s573_s3 + $0x28] sm:$0xff] }
   0x5   :  { %117 = vmatprep.subr.mxu0 %v80_v5  ;;  %v71_v15 = vld [vmem:[%s573_s3 + $0x20] sm:$0xff]  ;;  %v70_v16 = vld [vmem:[%s573_s3 + $0x18] sm:$0xff]  ;;  %v69_v18 = vld [vmem:[%s573_s3 + $0x10] sm:$0xff]  ;;  %v35_v47 = vsub.s32 0, %v34_v46  ;;  %v44_v48 = vsub.s32 1, %v34_v46  ;;  %v54_v49 = vsub.s32 2, %v34_v46 }
   0x6   :  { %355 = vset.pattern.permute.xlu0 %v366_v9  ;;  %118 = vmatpush1.msra.mxu0 %v79_v6  ;;  %v68_v19 = vld [vmem:[%s573_s3 + $0x8] sm:$0xff]  ;;  %v203_v20 = vld [vmem:[%s574_s5 + $0xf8] sm:$0xff]  ;;  %v202_v22 = vld [vmem:[%s574_s5 + $0xf0] sm:$0xff] }
   0x7   :  { %39 = vperm.xlu0 %355, %v26_v1   ;;  %119 = vmatprep.subr.mxu0 %v78_v7  ;;  %v187_v21 = vld [vmem:[%s574_s5 + $0x78] sm:$0xff]  ;;  %v67_v23 = vld [vmem:[%s573_s3] sm:$0xff]  ;;  %v186_v24 = vld [vmem:[%s574_s5 + $0x70] sm:$0xff] }
   0x8   :  { %120 = vmatpush1.msra.mxu0 %v77_v8  ;;  %315 = vmatprep.subr.mxu1 %v203_v20  ;;  %v201_v25 = vld [vmem:[%s574_s5 + $0xe8] sm:$0xff]  ;;  %v200_v27 = vld [vmem:[%s574_s5 + $0xe0] sm:$0xff]  ;;  %v199_v29 = vld [vmem:[%s574_s5 + $0xd8] sm:$0xff] }
   0x9   :  { %121 = vmatprep.subr.mxu0 %v76_v10  ;;  %316 = vmatpush3.msra.mxu1 %v187_v21  ;;  %v185_v26 = vld [vmem:[%s574_s5 + $0x68] sm:$0xff]  ;;  %v184_v28 = vld [vmem:[%s574_s5 + $0x60] sm:$0xff]  ;;  %v183_v30 = vld [vmem:[%s574_s5 + $0x58] sm:$0xff] }
   0xa   :  { %122 = vmatpush1.msra.mxu0 %v75_v11  ;;  %317 = vmatprep.subr.mxu1 %v202_v22  ;;  %v198_v31 = vld [vmem:[%s574_s5 + $0xd0] sm:$0xff]  ;;  %v197_v33 = vld [vmem:[%s574_s5 + $0xc8] sm:$0xff]  ;;  %v196_v35 = vld [vmem:[%s574_s5 + $0xc0] sm:$0xff] }
   0xb   :  { %123 = vmatprep.subr.mxu0 %v74_v12  ;;  %357 = vset.pattern.permute.xlu0 %v365_v2  ;;  %v182_v32 = vld [vmem:[%s574_s5 + $0x50] sm:$0xff]  ;;  %v181_v34 = vld [vmem:[%s574_s5 + $0x48] sm:$0xff]  ;;  %v180_v36 = vld [vmem:[%s574_s5 + $0x40] sm:$0xff] }
   0xc   :  { %124 = vmatpush1.msra.mxu0 %v73_v13  ;;  %318 = vmatpush3.msra.mxu1 %v186_v24  ;;  %v195_v37 = vld [vmem:[%s574_s5 + $0xb8] sm:$0xff]  ;;  %v194_v39 = vld [vmem:[%s574_s5 + $0xb0] sm:$0xff]  ;;  %v193_v41 = vld [vmem:[%s574_s5 + $0xa8] sm:$0xff] }
   0xd   :  { %125 = vmatprep.subr.mxu0 %v72_v14  ;;  %319 = vmatprep.subr.mxu1 %v201_v25  ;;  %v179_v38 = vld [vmem:[%s574_s5 + $0x38] sm:$0xff]  ;;  %v178_v40 = vld [vmem:[%s574_s5 + $0x30] sm:$0xff]  ;;  %v177_v42 = vld [vmem:[%s574_s5 + $0x28] sm:$0xff] }
   0xe   :  { %126 = vmatpush1.msra.mxu0 %v71_v15  ;;  %320 = vmatpush3.msra.mxu1 %v185_v26  ;;  %v192_v43 = vld [vmem:[%s574_s5 + $0xa0] sm:$0xff]  ;;  %v191_v1 = vld [vmem:[%s574_s5 + $0x98] sm:$0xff]  ;;  %v190_v3 = vld [vmem:[%s574_s5 + $0x90] sm:$0xff] }
   0xf   :  { %127 = vmatprep.subr.mxu0 %v70_v16  ;;  %321 = vmatprep.subr.mxu1 %v200_v27  ;;  %v176_v44 = vld [vmem:[%s574_s5 + $0x20] sm:$0xff]  ;;  %v175_v2 = vld [vmem:[%s574_s5 + $0x18] sm:$0xff]  ;;  %v174_v4 = vld [vmem:[%s574_s5 + $0x10] sm:$0xff] }
  0x10   :  { %128 = vmatpush1.msra.mxu0 %v69_v18  ;;  %322 = vmatpush3.msra.mxu1 %v184_v28  ;;  %v27_v50 = vld [vmem:[%s575_s1] sm:$0x7]  ;;  %v189_v5 = vld [vmem:[%s574_s5 + $0x88] sm:$0xff] }
  0x11   :  { %129 = vmatprep.subr.mxu0 %v68_v19  ;;  %323 = vmatprep.subr.mxu1 %v199_v29  ;;  %v36_v52 = vrot.slane %v27_v50, %v35_v47  ;;  %v45_v53 = vrot.slane %v27_v50, %v44_v48  ;;  %v55_v54 = vrot.slane %v27_v50, %v54_v49  ;;  %v312_v61 = vld [vmem:[%s576_s2] ss:$0 sm:$0xff]  ;;  %v173_v6 = vld [vmem:[%s574_s5 + $0x8] sm:$0xff] }
  0x12   :  { %130 = vmatpush1.msra.mxu0 %v67_v23  ;;  %324 = vmatpush3.msra.mxu1 %v183_v30  ;;  %v188_v7 = vld [vmem:[%s574_s5 + $0x80] sm:$0xff] }
  0x13   :  { %325 = vmatprep.subr.mxu1 %v198_v31  ;;  %v172_v8 = vld [vmem:[%s574_s5] sm:$0xff] }
  0x14   :  { %326 = vmatpush3.msra.mxu1 %v182_v32  ;;  %v83_v9 = vld [vmem:[%s577_s4] sm:$0x3] }
  0x15   :  { %327 = vmatprep.subr.mxu1 %v197_v33  ;;  %v88_v10 = vrot.slane %v83_v9, %v35_v47  ;;  %v92_v11 = vrot.slane %v83_v9, %v44_v48  ;;  %v314_v19 = vld [vmem:[%s578_s6] ss:$0 sm:$0xff] }
  0x16   :  { %328 = vmatpush3.msra.mxu1 %v181_v34  ;;  %v282_v34 = vand.u32 127, %v33_v45 }
  0x17   :  { %329 = vmatprep.subr.mxu1 %v196_v35 }
  0x18   :  { %330 = vmatpush3.msra.mxu1 %v180_v36  ;;  %vm304_vm3 = vcmp.eq.s32.totalorder %v282_v34, 0 }
  0x19   :  { %331 = vmatprep.subr.mxu1 %v195_v37 }
  0x1a   :  { %332 = vmatpush3.msra.mxu1 %v179_v38 }
  0x1b   :  { %333 = vmatprep.subr.mxu1 %v194_v39 }
  0x1c   :  { %334 = vmatpush3.msra.mxu1 %v178_v40 }
  0x1d   :  { %335 = vmatprep.subr.mxu1 %v193_v41 }
  0x1e   :  { %336 = vmatpush3.msra.mxu1 %v177_v42 }
  0x1f   :  { %337 = vmatprep.subr.mxu1 %v192_v43 }
  0x20   :  { %338 = vmatpush3.msra.mxu1 %v176_v44 }
  0x21   :  { %339 = vmatprep.subr.mxu1 %v191_v1 }
  0x22   :  { %340 = vmatpush3.msra.mxu1 %v175_v2 }
  0x23   :  { %341 = vmatprep.subr.mxu1 %v190_v3 }
  0x24   :  { %342 = vmatpush3.msra.mxu1 %v174_v4 }
  0x25   :  { %343 = vmatprep.subr.mxu1 %v189_v5 }
  0x26   :  { %344 = vmatpush3.msra.mxu1 %v173_v6 }
  0x27   :  { %345 = vmatprep.subr.mxu1 %v188_v7 }
  0x28   :  { %346 = vmatpush3.msra.mxu1 %v172_v8 }
  0x7d   :  { %v31_v51 = vpop.permute.xlu0 %30  ;;  %v50_v55 = vpop.permute.xlu1 %49 }
  0x7e   :  { %v37_v57 = vmul.f32 %v36_v52, %v31_v51  ;;  %v56_v59 = vmul.f32 %v55_v54, %v50_v55 }
  0x82   :  { %v40_v56 = vpop.permute.xlu0 %39 }
  0x83   :  { %v46_v58 = vmul.f32 %v45_v53, %v40_v56 }
  0x85   :  { %v47_v60 = vadd.f32 %v46_v58, %v37_v57 }
  0x87   :  { %v57_v62 = vadd.f32 %v56_v59, %v47_v60 }
  0x89   :  { %v65_v63 = vadd.f32 %v312_v61, %v57_v62 }
  0x8b   :  { %v66_v0 = vmax.f32 %v65_v63, 0.0 }
  0x8d   :  { %313 = vmatmul.mubr.msk.f32.vlgmr.msra.gmra.mxu0 %vm95_vm0, %v66_v0 }
 0x14d   :  { %v165_v12 = vpop.f32.mrf.mxu0 }
 0x14e   :  { %v166_v13 = vadd.f32 %v165_v12, %v88_v10 }
 0x14f   :  { %v167_v14 = vpop.f32.mrf.mxu0 }
 0x150   :  { %v168_v15 = vadd.f32 %v167_v14, %v92_v11  ;;  %v170_v17 = vmax.f32 %v166_v13, 0.0 }
 0x152   :  { %v171_v16 = vmax.f32 %v168_v15, 0.0 }
 0x154   :  { %275 = vmatprep.mubr.f32.mxu1 %v171_v16 }
 0x155   :  { %276 = vmatmul.mubr.f32.vlgmr.msra.gmra.mxu1 %v170_v17 }
 0x215   :  { %v347_v18 = vpop.f32.mrf.mxu1 }
 0x217   :  { %v348_v20 = vpop.f32.mrf.mxu1 }
 0x218   :  { %v349_v21 = vadd.f32 %v348_v20, %v347_v18 }
 0x21a   :  { %v278_v22 = vadd.f32 %v349_v21, %v314_v19 }
 0x21c   :  { %v288_v23 = vand.u32 2147483647, %v278_v22  ;;  %v285_v35 = vmax.f32 %v278_v22, 0.0  ;;  %vm286_vm2 = vcmp.ne.f32.partialorder %v278_v22, %v278_v22 }
 0x21e   :  { %v289_v24 = vsub.f32 0.0, %v288_v23 }
 0x220   :  { %v290_v25 = vmul.f32 1.442695, %v289_v24 }
 0x222   :  { %358 = vpow2.f32 %v290_v25 }
 0x22f   :  { %v359_v26 = vpop.eup %358 }
 0x230   :  { %v292_v27 = vadd.f32 1.0, %v359_v26  ;;  %v295_v28 = vmul.f32 -0.5, %v359_v26  ;;  %v298_v30 = vand.u32 2147483647, %v359_v26 }
 0x232   :  { %360 = vlog2.f32 %v292_v27  ;;  %v296_v29 = vadd.f32 1.0, %v295_v28  ;;  %vm299_vm1 = vcmp.lt.f32.partialorder %v298_v30, 0.0004427343 }
 0x233   :  { %362 = vtanh.f32 %v278_v22 }
 0x234   :  { %v297_v33 = vmul.f32 %v359_v26, %v296_v29 }
 0x23f   :  { %v361_v31 = vpop.eup %360 }
 0x240   :  { %v294_v32 = vmul.f32 0.6931472, %v361_v31  ;;  %v363_v37 = vpop.eup %362 }
 0x241   :  { %v284_v40 = vmul.f32 2.0, %v363_v37 }
 0x242   :  { %v300_v36 = vsel %vm299_vm1, %v297_v33, %v294_v32 }
 0x243   :  { %v301_v38 = vadd.f32 %v300_v36, %v285_v35 }
 0x245   :  { %v302_v39 = vsel %vm286_vm2, %v278_v22, %v301_v38 }
 0x246   :  { %v303_v41 = vadd.f32 0.001, %v302_v39 }
 0x248   :  { %v305_v42 = vsel %vm304_vm3, %v284_v40, %v303_v41 }
 0x249   :  { %307 = vst.msk [vmem:[%s579_s7] sm:$0xff] %vm306_vm4, %v305_v42 }

</bundles_post_ra>
